<compile_context>
chip_gen: v7x
topology: tpu7x:2x2x1
jax: 0.10.0
libtpu: 0.0.40
codegen_flags: <defaults>
</compile_context>

<pallas_src>
import functools

import jax
import jax.numpy as jnp
from jax.experimental import pallas as pl
from jax.experimental.pallas import tpu as pltpu

_EPS = 1e-5  # torch.nn.InstanceNorm2d default eps (affine=False in this module)


def _inorm_relu(z, inv_hw):
    """InstanceNorm2d(affine=False) + ReLU on a (C, HW) f32 tile, one-pass stats."""
    s = jnp.sum(z, axis=1, keepdims=True)
    ss = jnp.sum(z * z, axis=1, keepdims=True)
    m = s * inv_hw
    var = jnp.maximum(ss * inv_hw - m * m, 0.0)        # clamp: fp cancellation safety
    return jnp.maximum((z - m) * jax.lax.rsqrt(var + _EPS), 0.0)


def _fused_block_kernel(x_ref, w1_ref, w2_ref, w3_ref, o_ref, *, h, w, bt, mmd):
    """Whole BasicBlock_Dilated2 for `bt` images; all intermediates stay in VMEM/vregs.

    x_ref/o_ref: (bt, C, H*W).  w1_ref/w3_ref: (C, C).  w2_ref: (4, C, C) with
    k = kh*2 + kw matching the reflect-padded dilation-2 tap order.
    """
    hw = h * w
    inv_hw = 1.0 / hw
    f32 = jnp.float32
    c = x_ref.shape[1]

    # Weights: load once per grid step, cast to the MXU operand dtype.
    w1 = w1_ref[...].astype(mmd)
    w3 = w3_ref[...].astype(mmd)
    w2 = [w2_ref[k].astype(mmd) for k in range(4)]

    # Pixel-index masks for the reflection fixups (built once from an in-kernel iota).
    pos = jax.lax.broadcasted_iota(jnp.int32, (c, hw), 1)
    col = pos % w
    row0 = pos < w               # first image row
    rowl = pos >= hw - w         # last image row
    col0 = col == 0              # first image column
    coll = col == w - 1          # last image column

    def col_taps(r):
        """Column shifts j->j-1 and j->j+1 with reflection, on a (C, HW) tile."""
        left = pltpu.roll(r, 1, 1)           # out[p] = r[p - 1]
        right = pltpu.roll(r, hw - 1, 1)     # out[p] = r[p + 1]
        return (jnp.where(col0, right, left),    # kw=0: cols [1, 0, 1, ..., W-2]
                jnp.where(coll, left, right))    # kw=1: cols [1, 2, ..., W-1, W-2]

    for bi in range(bt):                                     # unrolled, bt is small
        x32 = x_ref[bi].astype(f32)                          # (C, HW)

        # ---- layer 1: 1x1 conv + IN + ReLU ----
        y1 = _inorm_relu(
            jnp.dot(w1, x32.astype(mmd), preferred_element_type=f32), inv_hw)

        # ---- layer 2: ReflectionPad2d(1) + 2x2 conv (dilation 2) + IN + ReLU ----
        # Row-reflected shifts of y1, built with lane rolls + selects (XLU/VPU slots).
        up = pltpu.roll(y1, w, 1)            # out[p] = y1[p - W]   (row i-1)
        down = pltpu.roll(y1, hw - w, 1)     # out[p] = y1[p + W]   (row i+1)
        r0 = jnp.where(row0, down, up)       # rows [1, 0, 1, ..., H-2]
        r1 = jnp.where(rowl, up, down)       # rows [1, 2, ..., H-1, H-2]
        t00, t01 = col_taps(r0)
        t10, t11 = col_taps(r1)

        z2 = jnp.dot(w2[0], t00.astype(mmd), preferred_element_type=f32)
        z2 = z2 + jnp.dot(w2[1], t01.astype(mmd), preferred_element_type=f32)
        z2 = z2 + jnp.dot(w2[2], t10.astype(mmd), preferred_element_type=f32)
        z2 = z2 + jnp.dot(w2[3], t11.astype(mmd), preferred_element_type=f32)
        y2 = _inorm_relu(z2, inv_hw)

        # ---- layer 3: 1x1 conv + IN + ReLU, then residual ----
        y3 = _inorm_relu(
            jnp.dot(w3, y2.astype(mmd), preferred_element_type=f32), inv_hw)
        o_ref[bi] = (y3 + x32).astype(o_ref.dtype)           # lane-dense (C, HW) store


def _pick_images_per_step(n):
    """Images per grid step: amortize per-step cost, keep >=2 steps for v7x's 2 TCs."""
    for bt in (8, 4, 2):
        if n % bt == 0 and n // bt >= 2:
            return bt
    return 1


def basic_block_dilated2(x_nchw, w1, b1, w2, b2, w3, b3, *,
                         matmul_dtype=jnp.float32):
    """Forward pass of BasicBlock_Dilated2 (stride=1, in_planes == planes).

    b1/b2/b3 are accepted for signature parity with the PyTorch module but unused:
    a per-channel bias added right before InstanceNorm2d(affine=False) is cancelled
    exactly by the mean subtraction (mathematical no-op).
    """
    del b1, b2, b3
    n, c, h, w = x_nchw.shape
    hw = h * w
    assert w1.shape == (c, c, 1, 1) and w3.shape == (c, c, 1, 1)
    assert w2.shape == (c, c, 2, 2)
    assert h >= 2 and w >= 2          # ReflectionPad2d(1) requirement

    bt = _pick_images_per_step(n)
    x_flat = x_nchw.reshape(n, c, hw)
    # (Cout, Cin, KH, KW) -> (KH*KW, Cout, Cin), k = kh*2 + kw matches the tap order.
    w2_k = jnp.transpose(w2, (2, 3, 0, 1)).reshape(4, c, c)

    kernel = functools.partial(_fused_block_kernel, h=h, w=w, bt=bt, mmd=matmul_dtype)

    out_flat = pl.pallas_call(
        kernel,
        out_shape=jax.ShapeDtypeStruct((n, c, hw), x_nchw.dtype),
        grid_spec=pltpu.PrefetchScalarGridSpec(
            num_scalar_prefetch=0,
            grid=(n // bt,),
            in_specs=[
                pl.BlockSpec((bt, c, hw), lambda i: (i, 0, 0)),
                pl.BlockSpec((c, c), lambda i: (0, 0)),
                pl.BlockSpec((4, c, c), lambda i: (0, 0, 0)),
                pl.BlockSpec((c, c), lambda i: (0, 0)),
            ],
            out_specs=pl.BlockSpec((bt, c, hw), lambda i: (i, 0, 0)),
        ),
        compiler_params=pltpu.CompilerParams(
            dimension_semantics=("parallel",)),   # images are independent
    )(x_flat, w1.reshape(c, c), w2_k, w3.reshape(c, c))

    return out_flat.reshape(n, c, h, w)


def _reference(x, w1, b1, w2, b2, w3, b3):
    """Pure-JAX reference mirroring the PyTorch module (biases kept to prove the no-op)."""
    dn = ("NCHW", "OIHW", "NCHW")
    hp = jax.lax.Precision.HIGHEST

    def inorm_relu(t):
        m = t.mean(axis=(2, 3), keepdims=True)
        v = jnp.mean(jnp.square(t - m), axis=(2, 3), keepdims=True)
        return jnp.maximum((t - m) * jax.lax.rsqrt(v + _EPS), 0.0)

    y = jax.lax.conv_general_dilated(x, w1, (1, 1), "VALID",
                                     dimension_numbers=dn, precision=hp)
    y = inorm_relu(y + b1.reshape(1, -1, 1, 1))
    yp = jnp.pad(y, ((0, 0), (0, 0), (1, 1), (1, 1)), mode="reflect")
    y = jax.lax.conv_general_dilated(yp, w2, (1, 1), "VALID",
                                     rhs_dilation=(2, 2),
                                     dimension_numbers=dn, precision=hp)
    y = inorm_relu(y + b2.reshape(1, -1, 1, 1))
    y = jax.lax.conv_general_dilated(y, w3, (1, 1), "VALID",
                                     dimension_numbers=dn, precision=hp)
    y = inorm_relu(y + b3.reshape(1, -1, 1, 1))
    return y + x


if __name__ == "__main__":
    # Residual requires in_planes == planes; planes=8 keeps sublane-full (C, HW) tiles.
    batch, planes, height, width = 2, 8, 16, 16

    key = jax.random.PRNGKey(0)
    keys = jax.random.split(key, 7)
    x = jax.random.normal(keys[0], (batch, planes, height, width), dtype=jnp.float32)

    # MyConv2D initializes weights/biases to zero (filled by a meta network in the
    # original code); use deterministic random values so the test is non-degenerate.
    def init_conv(kw_key, kb_key, cout, cin, ksz):
        fan_in = cin * ksz * ksz
        bound = 1.0 / (fan_in ** 0.5)
        wgt = jax.random.uniform(kw_key, (cout, cin, ksz, ksz),
                                 minval=-bound, maxval=bound, dtype=jnp.float32)
        bia = jax.random.uniform(kb_key, (cout,), minval=-bound, maxval=bound,
                                 dtype=jnp.float32)
        return wgt, bia

    w1, b1 = init_conv(keys[1], keys[2], planes, planes, 1)
    w2, b2 = init_conv(keys[3], keys[4], planes, planes, 2)
    w3, b3 = init_conv(keys[5], keys[6], planes, planes, 1)

    ref = _reference(x, w1, b1, w2, b2, w3, b3)

    # Default f32 MXU-operand path: tight tolerance.
    out = jax.block_until_ready(basic_block_dilated2(x, w1, b1, w2, b2, w3, b3))
    assert out.shape == x.shape, out.shape
    max_err = float(jnp.max(jnp.abs(out - ref)))
    assert jnp.allclose(out, ref, rtol=2e-3, atol=2e-3), max_err

    # bf16-operand / f32-accumulation path (recommended on v6e/v7x): looser tolerance.
    out_bf16 = jax.block_until_ready(
        basic_block_dilated2(x, w1, b1, w2, b2, w3, b3, matmul_dtype=jnp.bfloat16))
    max_err_bf16 = float(jnp.max(jnp.abs(out_bf16 - ref)))
    assert jnp.allclose(out_bf16, ref, rtol=1e-1, atol=1e-1), max_err_bf16

    print("KERNEL_OK")
</pallas_src>

<mosaic_0001>
module attributes {stable_mosaic.version = 11 : i64} {
  func.func @_fused_block_kernel(%arg0: i32, %arg1: memref<1x8x256xf32, #tpu.memory_space<vmem>>, %arg2: memref<8x8xf32, #tpu.memory_space<vmem>>, %arg3: memref<4x8x8xf32, #tpu.memory_space<vmem>>, %arg4: memref<8x8xf32, #tpu.memory_space<vmem>>, %arg5: memref<1x8x256xf32, #tpu.memory_space<vmem>>) attributes {dimension_semantics = [#tpu.dimension_semantics<parallel>], iteration_bounds = array<i64: 2>, scalar_prefetch = 0 : i64, scratch_operands = 0 : i64, tpu.core_type = #tpu.core_type<tc>, window_params = [{transform_indices = @transform_0, window_bounds = array<i64: 1, 8, 256>}, {pipeline_mode = #tpu.pipeline_mode<synchronous>, transform_indices = @transform_1, window_bounds = array<i64: 8, 8>}, {pipeline_mode = #tpu.pipeline_mode<synchronous>, transform_indices = @transform_2, window_bounds = array<i64: 4, 8, 8>}, {pipeline_mode = #tpu.pipeline_mode<synchronous>, transform_indices = @transform_3, window_bounds = array<i64: 8, 8>}, {transform_indices = @transform_4, window_bounds = array<i64: 1, 8, 256>}]} {
    %c0 = arith.constant 0 : index
    %c0_0 = arith.constant 0 : index
    %0 = vector.load %arg2[%c0, %c0_0] : memref<8x8xf32, #tpu.memory_space<vmem>>, vector<8x8xf32>
    %c0_1 = arith.constant 0 : index
    %c0_2 = arith.constant 0 : index
    %1 = vector.load %arg4[%c0_1, %c0_2] : memref<8x8xf32, #tpu.memory_space<vmem>>, vector<8x8xf32>
    %c0_3 = arith.constant 0 : index
    %c0_4 = arith.constant 0 : index
    %c0_5 = arith.constant 0 : index
    %2 = vector.load %arg3[%c0_3, %c0_4, %c0_5] : memref<4x8x8xf32, #tpu.memory_space<vmem>>, vector<1x8x8xf32>
    %3 = vector.shape_cast %2 : vector<1x8x8xf32> to vector<8x8xf32>
    %c1 = arith.constant 1 : index
    %c0_6 = arith.constant 0 : index
    %c0_7 = arith.constant 0 : index
    %4 = vector.load %arg3[%c1, %c0_6, %c0_7] : memref<4x8x8xf32, #tpu.memory_space<vmem>>, vector<1x8x8xf32>
    %5 = vector.shape_cast %4 : vector<1x8x8xf32> to vector<8x8xf32>
    %c2 = arith.constant 2 : index
    %c0_8 = arith.constant 0 : index
    %c0_9 = arith.constant 0 : index
    %6 = vector.load %arg3[%c2, %c0_8, %c0_9] : memref<4x8x8xf32, #tpu.memory_space<vmem>>, vector<1x8x8xf32>
    %7 = vector.shape_cast %6 : vector<1x8x8xf32> to vector<8x8xf32>
    %c3 = arith.constant 3 : index
    %c0_10 = arith.constant 0 : index
    %c0_11 = arith.constant 0 : index
    %8 = vector.load %arg3[%c3, %c0_10, %c0_11] : memref<4x8x8xf32, #tpu.memory_space<vmem>>, vector<1x8x8xf32>
    %9 = vector.shape_cast %8 : vector<1x8x8xf32> to vector<8x8xf32>
    %10 = tpu.iota {dimensions = array<i32: 1>} : vector<8x256xi32>
    %c16_i32 = arith.constant 16 : i32
    %c0_i32 = arith.constant 0 : i32
    %11 = arith.cmpi eq, %c16_i32, %c0_i32 : i32
    %c1_i32 = arith.constant 1 : i32
    %12 = arith.select %11, %c1_i32, %c16_i32 : i32
    %13 = vector.broadcast %12 : i32 to vector<8x256xi32>
    %14 = arith.remsi %10, %13 : vector<8x256xi32>
    %c0_i32_12 = arith.constant 0 : i32
    %15 = vector.broadcast %c0_i32_12 : i32 to vector<8x256xi32>
    %16 = arith.cmpi ne, %14, %15 : vector<8x256xi32>
    %c0_i32_13 = arith.constant 0 : i32
    %17 = vector.broadcast %c0_i32_13 : i32 to vector<8x256xi32>
    %18 = arith.cmpi slt, %14, %17 : vector<8x256xi32>
    %c0_i32_14 = arith.constant 0 : i32
    %19 = arith.cmpi slt, %12, %c0_i32_14 : i32
    %20 = vector.broadcast %19 : i1 to vector<8x256xi1>
    %21 = vector.broadcast %20 : vector<8x256xi1> to vector<8x256xi1>
    %22 = arith.xori %18, %21 : vector<8x256xi1>
    %23 = arith.andi %22, %16 : vector<8x256xi1>
    %24 = vector.broadcast %12 : i32 to vector<8x256xi32>
    %25 = arith.addi %14, %24 : vector<8x256xi32>
    %26 = arith.select %23, %25, %14 : vector<8x256xi1>, vector<8x256xi32>
    %c16_i32_15 = arith.constant 16 : i32
    %27 = vector.broadcast %c16_i32_15 : i32 to vector<8x256xi32>
    %28 = arith.cmpi slt, %10, %27 : vector<8x256xi32>
    %c240_i32 = arith.constant 240 : i32
    %29 = vector.broadcast %c240_i32 : i32 to vector<8x256xi32>
    %30 = arith.cmpi sge, %10, %29 : vector<8x256xi32>
    %c0_i32_16 = arith.constant 0 : i32
    %31 = vector.broadcast %c0_i32_16 : i32 to vector<8x256xi32>
    %32 = arith.cmpi eq, %26, %31 : vector<8x256xi32>
    %c15_i32 = arith.constant 15 : i32
    %33 = vector.broadcast %c15_i32 : i32 to vector<8x256xi32>
    %34 = arith.cmpi eq, %26, %33 : vector<8x256xi32>
    %c0_17 = arith.constant 0 : index
    %c0_18 = arith.constant 0 : index
    %c0_19 = arith.constant 0 : index
    %35 = vector.load %arg1[%c0_17, %c0_18, %c0_19] : memref<1x8x256xf32, #tpu.memory_space<vmem>>, vector<1x8x256xf32>
    %36 = vector.shape_cast %35 : vector<1x8x256xf32> to vector<8x256xf32>
    %cst = arith.constant dense<0.000000e+00> : vector<8x256xf32>
    %37 = tpu.matmul %0, %36, %cst {dimension_numbers = #tpu.dot_dimension_numbers<[1], [0], [0], [1], [0, 0, 1, 1], [], []>} : vector<8x8xf32>, vector<8x256xf32>, vector<8x256xf32> -> vector<8x256xf32>
    %cst_20 = arith.constant dense<0.000000e+00> : vector<8xf32>
    %38 = vector.multi_reduction <add>, %37, %cst_20 [1] : vector<8x256xf32> to vector<8xf32>
    %39 = vector.shape_cast %38 : vector<8xf32> to vector<8x1xf32>
    %40 = arith.mulf %37, %37 : vector<8x256xf32>
    %cst_21 = arith.constant dense<0.000000e+00> : vector<8xf32>
    %41 = vector.multi_reduction <add>, %40, %cst_21 [1] : vector<8x256xf32> to vector<8xf32>
    %42 = vector.shape_cast %41 : vector<8xf32> to vector<8x1xf32>
    %cst_22 = arith.constant 3.906250e-03 : f32
    %43 = vector.broadcast %cst_22 : f32 to vector<8x1xf32>
    %44 = arith.mulf %39, %43 : vector<8x1xf32>
    %cst_23 = arith.constant 3.906250e-03 : f32
    %45 = vector.broadcast %cst_23 : f32 to vector<8x1xf32>
    %46 = arith.mulf %42, %45 : vector<8x1xf32>
    %47 = arith.mulf %44, %44 : vector<8x1xf32>
    %48 = arith.subf %46, %47 : vector<8x1xf32>
    %cst_24 = arith.constant 0.000000e+00 : f32
    %49 = vector.broadcast %cst_24 : f32 to vector<8x1xf32>
    %50 = arith.maximumf %48, %49 : vector<8x1xf32>
    %51 = vector.broadcast %44 : vector<8x1xf32> to vector<8x256xf32>
    %52 = arith.subf %37, %51 : vector<8x256xf32>
    %cst_25 = arith.constant 9.99999974E-6 : f32
    %53 = vector.broadcast %cst_25 : f32 to vector<8x1xf32>
    %54 = arith.addf %50, %53 : vector<8x1xf32>
    %55 = math.rsqrt %54 : vector<8x1xf32>
    %56 = vector.broadcast %55 : vector<8x1xf32> to vector<8x256xf32>
    %57 = arith.mulf %52, %56 : vector<8x256xf32>
    %cst_26 = arith.constant 0.000000e+00 : f32
    %58 = vector.broadcast %cst_26 : f32 to vector<8x256xf32>
    %59 = arith.maximumf %57, %58 : vector<8x256xf32>
    %c16_i32_27 = arith.constant 16 : i32
    %60 = tpu.dynamic_rotate %59 by %c16_i32_27 dim 1 : vector<8x256xf32>, i32 -> vector<8x256xf32>
    %c240_i32_28 = arith.constant 240 : i32
    %61 = tpu.dynamic_rotate %59 by %c240_i32_28 dim 1 : vector<8x256xf32>, i32 -> vector<8x256xf32>
    %62 = arith.select %28, %61, %60 : vector<8x256xi1>, vector<8x256xf32>
    %63 = arith.select %30, %60, %61 : vector<8x256xi1>, vector<8x256xf32>
    %c1_i32_29 = arith.constant 1 : i32
    %64 = tpu.dynamic_rotate %62 by %c1_i32_29 dim 1 : vector<8x256xf32>, i32 -> vector<8x256xf32>
    %c255_i32 = arith.constant 255 : i32
    %65 = tpu.dynamic_rotate %62 by %c255_i32 dim 1 : vector<8x256xf32>, i32 -> vector<8x256xf32>
    %66 = arith.select %32, %65, %64 : vector<8x256xi1>, vector<8x256xf32>
    %67 = arith.select %34, %64, %65 : vector<8x256xi1>, vector<8x256xf32>
    %c1_i32_30 = arith.constant 1 : i32
    %68 = tpu.dynamic_rotate %63 by %c1_i32_30 dim 1 : vector<8x256xf32>, i32 -> vector<8x256xf32>
    %c255_i32_31 = arith.constant 255 : i32
    %69 = tpu.dynamic_rotate %63 by %c255_i32_31 dim 1 : vector<8x256xf32>, i32 -> vector<8x256xf32>
    %70 = arith.select %32, %69, %68 : vector<8x256xi1>, vector<8x256xf32>
    %71 = arith.select %34, %68, %69 : vector<8x256xi1>, vector<8x256xf32>
    %cst_32 = arith.constant dense<0.000000e+00> : vector<8x256xf32>
    %72 = tpu.matmul %3, %66, %cst_32 {dimension_numbers = #tpu.dot_dimension_numbers<[1], [0], [0], [1], [0, 0, 1, 1], [], []>} : vector<8x8xf32>, vector<8x256xf32>, vector<8x256xf32> -> vector<8x256xf32>
    %cst_33 = arith.constant dense<0.000000e+00> : vector<8x256xf32>
    %73 = tpu.matmul %5, %67, %cst_33 {dimension_numbers = #tpu.dot_dimension_numbers<[1], [0], [0], [1], [0, 0, 1, 1], [], []>} : vector<8x8xf32>, vector<8x256xf32>, vector<8x256xf32> -> vector<8x256xf32>
    %74 = arith.addf %72, %73 : vector<8x256xf32>
    %cst_34 = arith.constant dense<0.000000e+00> : vector<8x256xf32>
    %75 = tpu.matmul %7, %70, %cst_34 {dimension_numbers = #tpu.dot_dimension_numbers<[1], [0], [0], [1], [0, 0, 1, 1], [], []>} : vector<8x8xf32>, vector<8x256xf32>, vector<8x256xf32> -> vector<8x256xf32>
    %76 = arith.addf %74, %75 : vector<8x256xf32>
    %cst_35 = arith.constant dense<0.000000e+00> : vector<8x256xf32>
    %77 = tpu.matmul %9, %71, %cst_35 {dimension_numbers = #tpu.dot_dimension_numbers<[1], [0], [0], [1], [0, 0, 1, 1], [], []>} : vector<8x8xf32>, vector<8x256xf32>, vector<8x256xf32> -> vector<8x256xf32>
    %78 = arith.addf %76, %77 : vector<8x256xf32>
    %cst_36 = arith.constant dense<0.000000e+00> : vector<8xf32>
    %79 = vector.multi_reduction <add>, %78, %cst_36 [1] : vector<8x256xf32> to vector<8xf32>
    %80 = vector.shape_cast %79 : vector<8xf32> to vector<8x1xf32>
    %81 = arith.mulf %78, %78 : vector<8x256xf32>
    %cst_37 = arith.constant dense<0.000000e+00> : vector<8xf32>
    %82 = vector.multi_reduction <add>, %81, %cst_37 [1] : vector<8x256xf32> to vector<8xf32>
    %83 = vector.shape_cast %82 : vector<8xf32> to vector<8x1xf32>
    %cst_38 = arith.constant 3.906250e-03 : f32
    %84 = vector.broadcast %cst_38 : f32 to vector<8x1xf32>
    %85 = arith.mulf %80, %84 : vector<8x1xf32>
    %cst_39 = arith.constant 3.906250e-03 : f32
    %86 = vector.broadcast %cst_39 : f32 to vector<8x1xf32>
    %87 = arith.mulf %83, %86 : vector<8x1xf32>
    %88 = arith.mulf %85, %85 : vector<8x1xf32>
    %89 = arith.subf %87, %88 : vector<8x1xf32>
    %cst_40 = arith.constant 0.000000e+00 : f32
    %90 = vector.broadcast %cst_40 : f32 to vector<8x1xf32>
    %91 = arith.maximumf %89, %90 : vector<8x1xf32>
    %92 = vector.broadcast %85 : vector<8x1xf32> to vector<8x256xf32>
    %93 = arith.subf %78, %92 : vector<8x256xf32>
    %cst_41 = arith.constant 9.99999974E-6 : f32
    %94 = vector.broadcast %cst_41 : f32 to vector<8x1xf32>
    %95 = arith.addf %91, %94 : vector<8x1xf32>
    %96 = math.rsqrt %95 : vector<8x1xf32>
    %97 = vector.broadcast %96 : vector<8x1xf32> to vector<8x256xf32>
    %98 = arith.mulf %93, %97 : vector<8x256xf32>
    %cst_42 = arith.constant 0.000000e+00 : f32
    %99 = vector.broadcast %cst_42 : f32 to vector<8x256xf32>
    %100 = arith.maximumf %98, %99 : vector<8x256xf32>
    %cst_43 = arith.constant dense<0.000000e+00> : vector<8x256xf32>
    %101 = tpu.matmul %1, %100, %cst_43 {dimension_numbers = #tpu.dot_dimension_numbers<[1], [0], [0], [1], [0, 0, 1, 1], [], []>} : vector<8x8xf32>, vector<8x256xf32>, vector<8x256xf32> -> vector<8x256xf32>
    %cst_44 = arith.constant dense<0.000000e+00> : vector<8xf32>
    %102 = vector.multi_reduction <add>, %101, %cst_44 [1] : vector<8x256xf32> to vector<8xf32>
    %103 = vector.shape_cast %102 : vector<8xf32> to vector<8x1xf32>
    %104 = arith.mulf %101, %101 : vector<8x256xf32>
    %cst_45 = arith.constant dense<0.000000e+00> : vector<8xf32>
    %105 = vector.multi_reduction <add>, %104, %cst_45 [1] : vector<8x256xf32> to vector<8xf32>
    %106 = vector.shape_cast %105 : vector<8xf32> to vector<8x1xf32>
    %cst_46 = arith.constant 3.906250e-03 : f32
    %107 = vector.broadcast %cst_46 : f32 to vector<8x1xf32>
    %108 = arith.mulf %103, %107 : vector<8x1xf32>
    %cst_47 = arith.constant 3.906250e-03 : f32
    %109 = vector.broadcast %cst_47 : f32 to vector<8x1xf32>
    %110 = arith.mulf %106, %109 : vector<8x1xf32>
    %111 = arith.mulf %108, %108 : vector<8x1xf32>
    %112 = arith.subf %110, %111 : vector<8x1xf32>
    %cst_48 = arith.constant 0.000000e+00 : f32
    %113 = vector.broadcast %cst_48 : f32 to vector<8x1xf32>
    %114 = arith.maximumf %112, %113 : vector<8x1xf32>
    %115 = vector.broadcast %108 : vector<8x1xf32> to vector<8x256xf32>
    %116 = arith.subf %101, %115 : vector<8x256xf32>
    %cst_49 = arith.constant 9.99999974E-6 : f32
    %117 = vector.broadcast %cst_49 : f32 to vector<8x1xf32>
    %118 = arith.addf %114, %117 : vector<8x1xf32>
    %119 = math.rsqrt %118 : vector<8x1xf32>
    %120 = vector.broadcast %119 : vector<8x1xf32> to vector<8x256xf32>
    %121 = arith.mulf %116, %120 : vector<8x256xf32>
    %cst_50 = arith.constant 0.000000e+00 : f32
    %122 = vector.broadcast %cst_50 : f32 to vector<8x256xf32>
    %123 = arith.maximumf %121, %122 : vector<8x256xf32>
    %124 = arith.addf %123, %36 : vector<8x256xf32>
    %c0_51 = arith.constant 0 : index
    %c0_52 = arith.constant 0 : index
    %c0_53 = arith.constant 0 : index
    %125 = vector.load %arg5[%c0_51, %c0_52, %c0_53] : memref<1x8x256xf32, #tpu.memory_space<vmem>>, vector<1x8x256xf32>
    %126 = vector.shape_cast %125 : vector<1x8x256xf32> to vector<8x256xf32>
    %127 = vector.shape_cast %124 : vector<8x256xf32> to vector<1x8x256xf32>
    tpu.vector_store %arg5[%c0_51, %c0_52, %c0_53], %127 {strides = array<i32>} : memref<1x8x256xf32, #tpu.memory_space<vmem>>, vector<1x8x256xf32>,
    return
  }
  func.func @transform_0(%arg0: i32) -> (i32, i32, i32) {
    %c0_i32 = arith.constant 0 : i32
    %c0_i32_0 = arith.constant 0 : i32
    %c0_i32_1 = arith.constant 0 : i32
    return %arg0, %c0_i32, %c0_i32_0 : i32, i32, i32
  }
  func.func @transform_1(%arg0: i32) -> (i32, i32) {
    %c0_i32 = arith.constant 0 : i32
    %c0_i32_0 = arith.constant 0 : i32
    %c0_i32_1 = arith.constant 0 : i32
    return %c0_i32, %c0_i32_0 : i32, i32
  }
  func.func @transform_2(%arg0: i32) -> (i32, i32, i32) {
    %c0_i32 = arith.constant 0 : i32
    %c0_i32_0 = arith.constant 0 : i32
    %c0_i32_1 = arith.constant 0 : i32
    %c0_i32_2 = arith.constant 0 : i32
    return %c0_i32, %c0_i32_0, %c0_i32_1 : i32, i32, i32
  }
  func.func @transform_3(%arg0: i32) -> (i32, i32) {
    %c0_i32 = arith.constant 0 : i32
    %c0_i32_0 = arith.constant 0 : i32
    %c0_i32_1 = arith.constant 0 : i32
    return %c0_i32, %c0_i32_0 : i32, i32
  }
  func.func @transform_4(%arg0: i32) -> (i32, i32, i32) {
    %c0_i32 = arith.constant 0 : i32
    %c0_i32_0 = arith.constant 0 : i32
    %c0_i32_1 = arith.constant 0 : i32
    return %arg0, %c0_i32, %c0_i32_0 : i32, i32, i32
  }
}

</mosaic_0001>

<bundles_post_ra>
// kernel: tpu_custom_call.1
= control target key start
LH: loop header
LB: loop body
LE: loop exit
PB: predicated region body
PF: predicated region fallthrough
CT: control target
= control target key end

     0   :  { %9 = vsyncpa [#allocation3], 0  ;;  %s1575_s0 = inlined_call_operand.hbm [shape: f32[2,8,256], index: 0, kind: input, shape index: {}]   ;;  %s1576_s1 = inlined_call_operand.hbm [shape: f32[8,8], index: 1, kind: input, shape index: {}]   ;;  %s1577_s2 = inlined_call_operand.hbm [shape: f32[4,8,8], index: 2, kind: input, shape index: {}]   ;;  %s1578_s3 = inlined_call_operand.vmem [shape: f32[8,8], index: 3, kind: input, shape index: {}]   ;;  %s1579_s4 = inlined_call_operand.hbm [shape: f32[2,8,256], index: 4, kind: output, shape index: {}]  }
   0x1   :  { %11 = vsyncpa [#allocation3 + $0x1], 0 }
   0x2   :  { %12 = vsyncpa [#allocation6], 0 }
   0x3   :  { %13 = vsyncpa [#allocation4], 0 }
   0x4   :  { %15 = vsyncpa [#allocation4 + $0x1], 0  ;;  %s1264_s15 = smov 0   ;;  %s1266_s16 = smov 0  }
   0x5   :  { %s1268_s17 = smov 0   ;;  %s1270_s18 = smov 0  }
   0x6 LB: > { %s1285_s19 = sadd.s32 4294967295, %s1226_s18   ;;  %s958_s20 = sadd.s32 4294967294, %s1226_s18   ;;  %s1226_s18 = sphi %s1270_s18, %s1607_s18   ;;  %s1222_s17 = sphi %s1268_s17, %s1606_s17   ;;  %s1218_s16 = sphi %s1266_s16, %s1605_s16   ;;  %s1214_s15 = sphi %s1264_s15, %s1604_s15  }
   0x7   : > { %p41_p0 = scmp.ne.s32.totalorder %s1218_s16, %s1214_s15  ;;  %p1580_p1 = scmp.eq.s32.totalorder %s1285_s19, 0 }
   0x8   : > { %p134_p3 = scmp.eq.s32.totalorder %s958_s20, 1  ;;  %p959_p5 = scmp.ge.s32.totalorder %s1226_s18, 1 }
   0x9   : > { %p1294_p4 = por %p1580_p1, %p41_p0  ;;  %p141_p7 = scmp.lt.s32.totalorder %s1226_s18, 3 }
   0xa   : > { %p1299_p6 = por %p134_p3, %p41_p0  ;;  %s1228_s24 = smov [#allocation5]  }
   0xb   : > { %s1583_s21 = scalar_select %p1294_p4, 1, 0 }
   0xc   : > { %s1584_s22 = scalar_select %p1299_p6, 1, 0 }
   0xd   : > { %p1304_p8 = pnand %p959_p5, %p141_p7  ;;  %s154_s25 = sshll.u32 %s1228_s24, 4  ;;  %s155_s25 = int_to_ptr.vmem [resolvable:$true] %s154_s25 }
   0xe   : > { %s1229_s26 = smov [#allocation7]   ;;  %s1070_s5 = scalar_lea.hbm %s1576_s1, 128 }
   0xf   : > { %s1585_s23 = scalar_select %p1304_p8, 1, 0 }
  0x10   : > { %p1002_p10 = pneg %p1304_p8  ;;  %s164_s27 = sshll.u32 %s1229_s26, 4  ;;  %s1317_s27 = int_to_ptr.vmem [resolvable:$true] %s164_s27 }
  0x11   : > { %p1071_p12 = scmp.ne.s32.totalorder %s1576_s1, %s1070_s5  ;;  %p1077_p5 = scmp.lt.u32.totalorder %s1070_s5, %s1576_s1 }
  0x12   : > { %p1313_p11 = pnand %p1002_p10, %p1580_p1 }
  0x14   : > { %p1072_p13 = pneg %p1313_p11 }
  0x16   : > { %p1073_p0 = pnand %p1072_p13, %p1071_p12 }
  0x18   : > { %p1074_p3 = pneg %p1073_p0 }
  0x1a   : > { %p1079_p7 = pnand %p1077_p5, %p1074_p3 }
  0x1c   : > { %1082 = shalt.err (!%p1079_p7)
}
  0x1d   : > { %s1083_s10 = scalar_lea.vmem %s155_s25, 128  ;;  %p1091_p2 = scmp.lt.s32.totalorder %s155_s25, %s155_s25 }
  0x1e   : > { %p1084_p10 = scmp.ne.s32.totalorder %s155_s25, %s1083_s10  ;;  %p1092_p6 = scmp.lt.s32.totalorder %s1083_s10, %s1083_s10 }
  0x20   : > { %p1086_p9 = pnand %p1084_p10, %p1072_p13  ;;  %p1093_p4 = por %p1092_p6, %p1091_p2 }
  0x22   : > { %p1087_p1 = pneg %p1086_p9 }
  0x24   : > { %p1094_p8 = pnand %p1093_p4, %p1087_p1 }
  0x26   : > { %1097 = shalt.err (!%p1094_p8)
}
  0x27   : > { %1005 = dma.hbm_to_vmem [thread:$0]  (!%p1313_p11), %s1576_s1, 128, %s155_s25, [#allocation6]  }
  0x28   : > { %s1098_s20 = scalar_lea.hbm %s1577_s2, 512 }
  0x29   : > { %p1099_p9 = scmp.ne.s32.totalorder %s1577_s2, %s1098_s20  ;;  %p1105_p4 = scmp.lt.u32.totalorder %s1098_s20, %s1577_s2 }
  0x2b   : > { %p1101_p2 = pnand %p1099_p9, %p1072_p13 }
  0x2d   : > { %p1102_p1 = pneg %p1101_p2 }
  0x2f   : > { %p1107_p6 = pnand %p1105_p4, %p1102_p1 }
  0x31   : > { %1110 = shalt.err (!%p1107_p6)
}
  0x32   : > { %s1111_s25 = scalar_lea.vmem %s1317_s27, 512  ;;  %p1119_p3 = scmp.lt.s32.totalorder %s1317_s27, %s1317_s27 }
  0x33   : > { %p1112_p8 = scmp.ne.s32.totalorder %s1317_s27, %s1111_s25  ;;  %p1120_p5 = scmp.lt.s32.totalorder %s1111_s25, %s1111_s25 }
  0x35   : > { %p1114_p12 = pnand %p1112_p8, %p1072_p13  ;;  %p1121_p7 = por %p1120_p5, %p1119_p3 }
  0x37   : > { %p1115_p0 = pneg %p1114_p12 }
  0x39   : > { %p1122_p10 = pnand %p1121_p7, %p1115_p0 }
  0x3b   : > { %1125 = shalt.err (!%p1122_p10)
}
  0x3c   : > { %s1230_s5 = smov 128   ;;  %s1231_s6 = smov 8  }
  0x3d   : > { %1008 = dma.hbm_to_vmem [thread:$0]  (!%p1313_p11), %s1577_s2, 512, %s1317_s27, [#allocation6], %s1230_s5, %s1230_s5, %s1231_s6  }
  0x3e   : > { %s1367_s9 = sadd.s32 1, %s1226_s18   ;;  %s28_s10 = sadd.s32 1, %s1222_s17 }
  0x3f   : > { %s25_s11 = ssub.s32 %s1226_s18, %s1367_s9  ;;  %p35_p13 = scmp.ne.s32.totalorder %s1222_s17, %s1218_s16 }
  0x40   : > { %p26_p9 = scmp.eq.s32.totalorder %s25_s11, 0  ;;  %p36_p2 = scmp.eq.s32.totalorder %s1226_s18, 0 }
  0x41   : > { %p1587_p1 = scmp.eq.s32.totalorder %s1285_s19, 1  ;;  %p1019_p6 = scmp.lt.s32.totalorder %s1226_s18, 2 }
  0x42   : > { %s1383_s13 = scalar_select %p26_p9, %s1222_s17, %s28_s10  }
  0x43   : > { %p1377_p4 = por %p1587_p1, %p35_p13  ;;  %p37_p8 = por %p36_p2, %p35_p13 }
  0x44   : > { %s181_s28 = sand.u32 1, %s1222_s17   ;;  %s982_s27 = sshll.u32 %s1226_s18, 8 }
  0x45   : > { %s963_s14 = sshll.u32 %s181_s28, 4  ;;  %s1390_s26 = scalar_lea.hbm %s1575_s0, %s982_s27 }
  0x46   : > { %s185_s29 = scalar_lea.vmem [#allocation2], %s963_s14  ;;  %p1394_p11 = pnand %p1019_p6, %p37_p8 }
  0x47   : > { %s193_s30 = sshll.u32 %s185_s29, 4  ;;  %s182_s5 = scalar_lea.sflag [#allocation3], %s181_s28  ;;  %s1392_s30 = int_to_ptr.vmem [resolvable:$true] %s193_s30 }
  0x48   : > { %s1126_s6 = scalar_lea.hbm %s1390_s26, 256  ;;  %p1128_p0 = pneg %p1394_p11 }
  0x49   : > { %p1127_p12 = scmp.ne.s32.totalorder %s1390_s26, %s1126_s6  ;;  %s1131_s10 = scalar_lea.hbm %s1575_s0, 512 }
  0x4a   : > { %p1132_p7 = scmp.lt.u32.totalorder %s1390_s26, %s1575_s0  ;;  %p1133_p10 = scmp.lt.u32.totalorder %s1131_s10, %s1126_s6 }
  0x4b   : > { %p1129_p3 = pnand %p1128_p0, %p1127_p12  ;;  %p1135_p9 = scmp.lt.u32.totalorder %s1126_s6, %s1390_s26 }
  0x4c   : > { %p1134_p13 = por %p1133_p10, %p1132_p7 }
  0x4d   : > { %p1130_p5 = pneg %p1129_p3 }
  0x4e   : > { %p1136_p2 = por %p1135_p9, %p1134_p13 }
  0x50   : > { %p1137_p1 = pnand %p1136_p2, %p1130_p5 }
  0x52   : > { %1140 = shalt.err (!%p1137_p1)
}
  0x53   : > { %s1141_s28 = scalar_lea.vmem %s1392_s30, 256  ;;  %s1232_s27 = smov [#allocation2]  }
  0x54   : > { %p1142_p6 = scmp.ne.s32.totalorder %s1392_s30, %s1141_s28  ;;  %s1146_s20 = sshll.u32 %s1232_s27, 4  ;;  %s1147_s20 = int_to_ptr.vmem [resolvable:$false] %s1146_s20 }
  0x55   : > { %s1148_s24 = scalar_lea.vmem %s1147_s20, 512  ;;  %p1149_p3 = scmp.lt.s32.totalorder %s1392_s30, %s1147_s20 }
  0x56   : > { %p1144_p8 = pnand %p1142_p6, %p1128_p0  ;;  %p1150_p7 = scmp.lt.s32.totalorder %s1148_s24, %s1141_s28 }
  0x58   : > { %p1145_p12 = pneg %p1144_p8  ;;  %p1151_p10 = por %p1150_p7, %p1149_p3 }
  0x5a   : > { %p1152_p13 = pnand %p1151_p10, %p1145_p12 }
  0x5c   : > { %1155 = shalt.err (!%p1152_p13)
}
  0x5d   : > { %1012 = dma.hbm_to_vmem [thread:$0]  (!%p1394_p11), %s1390_s26, 256, %s1392_s30, %s182_s5  }
  0x5e   : > { %p1590_p5 = scmp.ne.s32.totalorder %s1585_s23, 0 }
  0x5f   : > { %s1426_s29 = sand.u32 (!%p1590_p5), 1, %s1218_s16   ;;  %p1591_p0 = scmp.ne.s32.totalorder (!%p1590_p5), %s1583_s21, 0 }
  0x60   : > { %202 = sbr.rel (%p1590_p5) target bundleno = 1546 (0x60a), region = 36  ;;  %s967_s6 = sshll.u32 (!%p1590_p5), %s1426_s29, 4 }
  0x61   : > { %s205_s7 = scalar_lea.sflag (!%p1590_p5), [#allocation3], %s1426_s29  ;;  %s208_s8 = scalar_lea.vmem (!%p1590_p5), [#allocation2], %s967_s6 }
  0x67   : > { %1201 = dma.done.wait (%p1591_p0), %s205_s7, 256  }
  0x68   : > { %1203 = vsyncadd (%p1591_p0), %s205_s7, 4294967040  ;;  %p1592_p11 = scmp.eq.s32.totalorder %s1285_s19, 0 }
  0x6a   : > { %1205 = dma.done.wait (%p1592_p11), [#allocation6], 640   ;;  %p1593_p9 = pmov %p1592_p11 }
  0x6b   : > { %v1233_v0 = vmov 0.0   ;;  %v1442_v1 = vld [vmem:[%s208_s8 + $0x8] sm:$0xff]  ;;  %v1444_v2 = vld [vmem:[%s208_s8] sm:$0xff]  ;;  %vm287_vm0 = vcmask 64512   ;;  %s1234_s21 = smov 112   ;;  %s1235_s23 = smov 16   ;;  %v250_v25 = vlaneseq }
  0x6c   : > { %1207 = vsyncadd (%p1593_p9), [#allocation6], 4294966656  ;;  %355 = vmatprep.mubr.f32.mxu0 %v1233_v0  ;;  %575 = vmatprep.mubr.f32.mxu1 %v1233_v0  ;;  %v241_v3 = vld [vmem:[#allocation5] sm:$0xff]  ;;  %s1236_s26 = smov 1   ;;  %s1237_s30 = smov 127   ;;  %v243_v57 = vld [vmem:[#allocation7] sm:$0xff] }
  0x6d   : > { %291 = vmatprep.subr.mxu0 %v1442_v1  ;;  %v1450_v26 = vand.u32 127, %v250_v25  ;;  %v245_v58 = vld [vmem:[#allocation7 + $0x8] sm:$0xff]  ;;  %s983_s10 = sshll.u32 %s1285_s19, 8  ;;  %s240_s11 = scalar_lea.vmem [#allocation8], %s967_s6 }
  0x6e   : > { %292 = vmatpush1.msra.mxu0 %v1444_v2  ;;  %s869_s14 = sshll.u32 %s240_s11, 4  ;;  %s1531_s20 = scalar_lea.hbm %s1579_s4, %s983_s10  ;;  %s1533_s14 = int_to_ptr.vmem [resolvable:$true] %s869_s14 }
  0x6f   : > { %971 = vmatmul.mubr.msk.f32.vlgmr.msra.gmra.mrb[0].mxu0 %vm287_vm0, %v241_v3  ;;  %vm277_vm1 = vcmp.lt.s32.totalorder %v1450_v26, 16  ;;  %v252_v28 = vadd.s32 128, %v1450_v26  ;;  %vm393_vm2 = vcmp.lt.s32.totalorder %v1450_v26, 112  ;;  %v257_v41 = vand.u32 15, %v1450_v26  ;;  %s855_s19 = scalar_lea.sflag [#allocation4], %s1426_s29  ;;  %s1156_s24 = scalar_lea.vmem %s1533_s14, 256 }
  0x70   : > { %501 = vmatprep.mubr.f32.mxu0 %v1233_v0  ;;  %vm404_vm4 = vcmp.lt.s32.totalorder %v1450_v26, 1  ;;  %vm411_vm5 = vcmp.lt.s32.totalorder %v1450_v26, 127  ;;  %p1157_p2 = scmp.ne.s32.totalorder %s1533_s14, %s1156_s24  ;;  %s1238_s6 = smov [#allocation8]  }
  0x71   : > { %vm280_vm3 = vcmp.ge.s32.totalorder %v252_v28, 240  ;;  %v264_v40 = vand.u32 15, %v252_v28  ;;  %vm1472_vm8 = vcmp.eq.s32.totalorder %v257_v41, 15  ;;  %vm1476_vm9 = vcmp.eq.s32.totalorder %v257_v41, 0  ;;  %s1160_s7 = sshll.u32 %s1238_s6, 4  ;;  %s1161_s7 = int_to_ptr.vmem [resolvable:$false] %s1160_s7 }
  0x72   : > { %p1158_p1 = pnand %p1157_p2, %p1377_p4  ;;  %s1162_s8 = scalar_lea.vmem %s1161_s7, 512 }
  0x73   : > { %vm1464_vm6 = vcmp.eq.s32.totalorder %v264_v40, 15  ;;  %vm1468_vm7 = vcmp.eq.s32.totalorder %v264_v40, 0  ;;  %p1163_p8 = scmp.lt.s32.totalorder %s1533_s14, %s1161_s7  ;;  %p1164_p12 = scmp.lt.s32.totalorder %s1162_s8, %s1156_s24 }
  0x74   : > { %p1159_p6 = pneg %p1158_p1 }
  0x75   : > { %p1165_p3 = por %p1164_p12, %p1163_p8 }
  0x77   : > { %p1166_p7 = pnand %p1165_p3, %p1159_p6 }
 0x142   : > { %v357_v4 = vpop.f32.mrb[0].mxu0 }
 0x143   : > { %v359_v5 = vpop.f32.mrb[1].mxu0  ;;  %v365_v6 = vmul.f32 %v357_v4, %v357_v4 }
 0x144   : > { %v362_v7 = vadd.f32 %v359_v5, %v357_v4  ;;  %v366_v8 = vmul.f32 %v359_v5, %v359_v5 }
 0x146   : > { %363 = vadd.xlane.f32.xlu0 %v362_v7  ;;  %v367_v9 = vadd.f32 %v366_v8, %v365_v6  ;;  %v247_v7 = vld [vmem:[#allocation7 + $0x10] sm:$0xff] }
 0x14a   : > { %368 = vadd.xlane.f32.xlu0 %v367_v9 }
 0x1d3   : > { %v364_v10 = vpop.xlane.xlu0 %363 }
 0x1d4   : > { %v370_v11 = vmul.f32 0.00390625, %v364_v10  ;;  %v249_v10 = vld [vmem:[#allocation7 + $0x18] sm:$0xff] }
 0x1d6   : > { %v372_v13 = vmul.f32 %v370_v11, %v370_v11  ;;  %v375_v18 = vsub.f32 %v357_v4, %v370_v11  ;;  %v376_v20 = vsub.f32 %v359_v5, %v370_v11 }
 0x1d7   : > { %v369_v12 = vpop.xlane.xlu0 %368 }
 0x1d8   : > { %v371_v14 = vmul.f32 0.00390625, %v369_v12 }
 0x1da   : > { %v373_v15 = vsub.f32 %v371_v14, %v372_v13 }
 0x1dc   : > { %v374_v16 = vmax.f32 %v373_v15, 0.0 }
 0x1de   : > { %v377_v17 = vadd.f32 1e-05, %v374_v16 }
 0x1e0   : > { %1064 = vrsqrt.f32 %v377_v17 }
 0x1ea   : > { %v1065_v19 = vpop.eup %1064 }
 0x1eb   : > { %v379_v21 = vmul.f32 %v1065_v19, %v375_v18  ;;  %v380_v23 = vmul.f32 %v1065_v19, %v376_v20 }
 0x1ed   : > { %v381_v22 = vmax.f32 %v379_v21, 0.0  ;;  %v382_v24 = vmax.f32 %v380_v23, 0.0 }
 0x1ef   : > { %389 = vrot.lane.b32.xlu0 %v381_v22, %s1234_s21  ;;  %383 = vrot.lane.b32.xlu1 %v381_v22, %s1235_s23 }
 0x1f3   : > { %385 = vrot.lane.b32.xlu1 %v382_v24, %s1235_s23 }
 0x1f7   : > { %391 = vrot.lane.b32.xlu1 %v382_v24, %s1234_s21 }
 0x261   : > { %v384_v27 = vpop.permute.xlu1 %383  ;;  %v390_v31 = vpop.permute.xlu0 %389 }
 0x265   : > { %v386_v29 = vpop.permute.xlu1 %385 }
 0x266   : > { %v387_v30 = vsel %vm277_vm1, %v384_v27, %v386_v29  ;;  %v388_v36 = vsel %vm277_vm1, %v386_v29, %v384_v27 }
 0x267   : > { %402 = vrot.lane.b32.xlu1 %v387_v30, %s1236_s26 }
 0x269   : > { %v392_v32 = vpop.permute.xlu1 %391 }
 0x26a   : > { %v395_v33 = vsel %vm393_vm2, %v392_v32, %v390_v31  ;;  %v394_v34 = vsel %vm393_vm2, %v390_v31, %v392_v32 }
 0x26b   : > { %409 = vrot.lane.b32.xlu1 %v387_v30, %s1237_s30  ;;  %v399_v35 = vsel %vm280_vm3, %v387_v30, %v395_v33  ;;  %v396_v37 = vsel %vm277_vm1, %v394_v34, %v388_v36 }
 0x26c   : > { %420 = vrot.lane.b32.xlu0 %v399_v35, %s1236_s26 }
 0x26f   : > { %400 = vrot.lane.b32.xlu1 %v396_v37, %s1236_s26 }
 0x270   : > { %426 = vrot.lane.b32.xlu0 %v399_v35, %s1237_s30  ;;  %v242_v35 = vld [vmem:[%s1578_s3] sm:$0xff] }
 0x273   : > { %407 = vrot.lane.b32.xlu1 %v396_v37, %s1237_s30 }
 0x277   : > { %418 = vrot.lane.b32.xlu1 %v394_v34, %s1236_s26 }
 0x27b   : > { %424 = vrot.lane.b32.xlu1 %v394_v34, %s1237_s30 }
 0x2d9   : > { %v403_v38 = vpop.permute.xlu1 %402 }
 0x2dd   : > { %v410_v39 = vpop.permute.xlu1 %409 }
 0x2de   : > { %v421_v52 = vpop.permute.xlu0 %420 }
 0x2e1   : > { %v401_v42 = vpop.permute.xlu1 %400 }
 0x2e2   : > { %v405_v48 = vsel %vm404_vm4, %v401_v42, %v403_v38  ;;  %v406_v49 = vsel %vm404_vm4, %v403_v38, %v401_v42  ;;  %v427_v60 = vpop.permute.xlu0 %426 }
 0x2e5   : > { %v408_v47 = vpop.permute.xlu1 %407 }
 0x2e6   : > { %v412_v50 = vsel %vm411_vm5, %v408_v47, %v410_v39  ;;  %v413_v51 = vsel %vm411_vm5, %v410_v39, %v408_v47 }
 0x2e7   : > { %v417_v53 = vsel %vm1464_vm6, %v405_v48, %v413_v51  ;;  %v415_v54 = vsel %vm1468_vm7, %v413_v51, %v405_v48  ;;  %v416_v55 = vsel %vm1472_vm8, %v406_v49, %v412_v50  ;;  %v414_v56 = vsel %vm1476_vm9, %v412_v50, %v406_v49 }
 0x2e8   : > { %437 = vmatprep.subr.mxu0 %v417_v53  ;;  %511 = vmatprep.subr.mxu1 %v415_v54 }
 0x2e9   : > { %438 = vmatpush1.msra.mxu0 %v416_v55  ;;  %512 = vmatpush1.msra.mxu1 %v414_v56  ;;  %v419_v59 = vpop.permute.xlu1 %418 }
 0x2ea   : > { %973 = vmatmul.mubr.msk.f32.vlgmr.msra.gmra.mrb[0].mxu1 %vm287_vm0, %v243_v57  ;;  %972 = vmatmul.mubr.msk.f32.vlgmr.msra.gmra.mrb[2].mxu0 %vm287_vm0, %v245_v58  ;;  %v422_v62 = vsel %vm404_vm4, %v419_v59, %v421_v52  ;;  %v423_v63 = vsel %vm404_vm4, %v421_v52, %v419_v59 }
 0x2eb   : > { %649 = vmatprep.mubr.f32.mxu1 %v1233_v0  ;;  %822 = vmatprep.mubr.f32.mxu0 %v1233_v0 }
 0x2ed   : > { %v425_v61 = vpop.permute.xlu1 %424 }
 0x2ee   : > { %v428_v3 = vsel %vm411_vm5, %v425_v61, %v427_v60  ;;  %v429_v4 = vsel %vm411_vm5, %v427_v60, %v425_v61 }
 0x2ef   : > { %v431_v5 = vsel %vm1468_vm7, %v429_v4, %v422_v62  ;;  %v430_v6 = vsel %vm1476_vm9, %v428_v3, %v423_v63  ;;  %v433_v8 = vsel %vm1464_vm6, %v422_v62, %v429_v4  ;;  %v432_v9 = vsel %vm1472_vm8, %v423_v63, %v428_v3 }
 0x2f0   : > { %585 = vmatprep.subr.mxu1 %v431_v5 }
 0x2f1   : > { %586 = vmatpush1.msra.mxu1 %v430_v6 }
 0x2f2   : > { %974 = vmatmul.mubr.msk.f32.vlgmr.msra.gmra.mrb[0].mxu1 %vm287_vm0, %v247_v7  ;;  %661 = vmatprep.subr.mxu1 %v433_v8 }
 0x2f3   : > { %662 = vmatpush1.msra.mxu1 %v432_v9  ;;  %725 = vmatprep.mubr.f32.mxu1 %v1233_v0 }
 0x2fa   : > { %975 = vmatmul.mubr.msk.f32.vlgmr.msra.gmra.mrb[0].mxu1 %vm287_vm0, %v249_v10 }
 0x3bd   : > { %v503_v11 = vpop.f32.mrb[2].mxu0 }
 0x3be   : > { %v505_v12 = vpop.f32.mrb[3].mxu0 }
 0x3cd   : > { %v727_v13 = vpop.f32.mrb[0].mxu1 }
 0x3ce   : > { %v984_v14 = vadd.f32 %v727_v13, %v503_v11  ;;  %v729_v15 = vpop.f32.mrb[1].mxu1 }
 0x3cf   : > { %v985_v16 = vadd.f32 %v729_v15, %v505_v12 }
 0x3d0   : > { %v737_v17 = vmul.f32 %v984_v14, %v984_v14 }
 0x3d1   : > { %v734_v18 = vadd.f32 %v985_v16, %v984_v14  ;;  %v738_v19 = vmul.f32 %v985_v16, %v985_v16 }
 0x3d3   : > { %735 = vadd.xlane.f32.xlu1 %v734_v18  ;;  %v739_v20 = vadd.f32 %v738_v19, %v737_v17 }
 0x3d5   : > { %740 = vadd.xlane.f32.xlu0 %v739_v20 }
 0x460   : > { %v736_v21 = vpop.xlane.xlu1 %735 }
 0x461   : > { %v742_v22 = vmul.f32 0.00390625, %v736_v21 }
 0x462   : > { %v741_v23 = vpop.xlane.xlu0 %740 }
 0x463   : > { %v743_v24 = vmul.f32 0.00390625, %v741_v23  ;;  %v744_v0 = vmul.f32 %v742_v22, %v742_v22  ;;  %v747_v28 = vsub.f32 %v984_v14, %v742_v22  ;;  %v748_v29 = vsub.f32 %v985_v16, %v742_v22 }
 0x465   : > { %v745_v25 = vsub.f32 %v743_v24, %v744_v0 }
 0x467   : > { %v746_v26 = vmax.f32 %v745_v25, 0.0 }
 0x469   : > { %v749_v27 = vadd.f32 1e-05, %v746_v26 }
 0x46b   : > { %1066 = vrsqrt.f32 %v749_v27 }
 0x475   : > { %v1067_v30 = vpop.eup %1066 }
 0x476   : > { %v752_v31 = vmul.f32 %v1067_v30, %v748_v29  ;;  %v751_v32 = vmul.f32 %v1067_v30, %v747_v28 }
 0x478   : > { %v754_v33 = vmax.f32 %v752_v31, 0.0  ;;  %v753_v34 = vmax.f32 %v751_v32, 0.0 }
 0x47a   : > { %758 = vmatprep.subr.mxu0 %v754_v33 }
 0x47b   : > { %759 = vmatpush1.msra.mxu0 %v753_v34 }
 0x47c   : > { %976 = vmatmul.mubr.msk.f32.vlgmr.msra.gmra.mrb[4].mxu0 %vm287_vm0, %v242_v35 }
 0x54f   : > { %v824_v36 = vpop.f32.mrb[4].mxu0 }
 0x550   : > { %v826_v37 = vpop.f32.mrb[5].mxu0  ;;  %v832_v38 = vmul.f32 %v824_v36, %v824_v36 }
 0x551   : > { %v833_v39 = vmul.f32 %v826_v37, %v826_v37  ;;  %v829_v40 = vadd.f32 %v826_v37, %v824_v36 }
 0x553   : > { %830 = vadd.xlane.f32.xlu0 %v829_v40  ;;  %v834_v41 = vadd.f32 %v833_v39, %v832_v38 }
 0x555   : > { %835 = vadd.xlane.f32.xlu1 %v834_v41 }
 0x5e0   : > { %v831_v42 = vpop.xlane.xlu0 %830 }
 0x5e1   : > { %v837_v43 = vmul.f32 0.00390625, %v831_v42 }
 0x5e2   : > { %v836_v44 = vpop.xlane.xlu1 %835 }
 0x5e3   : > { %v838_v45 = vmul.f32 0.00390625, %v836_v44  ;;  %v839_v46 = vmul.f32 %v837_v43, %v837_v43  ;;  %v842_v50 = vsub.f32 %v824_v36, %v837_v43  ;;  %v843_v51 = vsub.f32 %v826_v37, %v837_v43 }
 0x5e5   : > { %v840_v47 = vsub.f32 %v838_v45, %v839_v46 }
 0x5e7   : > { %v841_v48 = vmax.f32 %v840_v47, 0.0 }
 0x5e9   : > { %v844_v49 = vadd.f32 1e-05, %v841_v48 }
 0x5eb   : > { %1068 = vrsqrt.f32 %v844_v49 }
 0x5f5   : > { %v1069_v52 = vpop.eup %1068 }
 0x5f6   : > { %v846_v53 = vmul.f32 %v1069_v52, %v842_v50  ;;  %v847_v54 = vmul.f32 %v1069_v52, %v843_v51 }
 0x5f8   : > { %v848_v55 = vmax.f32 %v846_v53, 0.0  ;;  %v849_v56 = vmax.f32 %v847_v54, 0.0 }
 0x5fa   : > { %v850_v57 = vadd.f32 %v848_v55, %v1444_v2  ;;  %v851_v58 = vadd.f32 %v849_v56, %v1442_v1 }
 0x5fc   : > { %852 = vst [vmem:[%s240_s11] sm:$0xff] %v850_v57  ;;  %853 = vst [vmem:[%s240_s11 + $0x8] sm:$0xff] %v851_v58 }
 0x5fd   : > { %1169 = shalt.err (!%p1166_p7)
}
 0x5fe   : > { %s1170_s29 = scalar_lea.hbm %s1531_s20, 256  ;;  %s1174_s26 = scalar_lea.hbm %s1579_s4, 512 }
 0x5ff   : > { %p1171_p10 = scmp.ne.s32.totalorder %s1531_s20, %s1170_s29  ;;  %p1175_p0 = scmp.lt.u32.totalorder %s1531_s20, %s1579_s4 }
 0x600   : > { %p1176_p11 = scmp.lt.u32.totalorder %s1174_s26, %s1170_s29  ;;  %p1178_p2 = scmp.lt.u32.totalorder %s1170_s29, %s1531_s20 }
 0x601   : > { %p1172_p13 = pnand %p1171_p10, %p1377_p4 }
 0x602   : > { %p1177_p9 = por %p1176_p11, %p1175_p0 }
 0x603   : > { %p1173_p5 = pneg %p1172_p13 }
 0x604   : > { %p1179_p1 = por %p1178_p2, %p1177_p9 }
 0x606   : > { %p1180_p6 = pnand %p1179_p1, %p1173_p5 }
 0x608   : > { %1183 = shalt.err (!%p1180_p6)
}
 0x609   : > { %1000 = dma.vmem_to_hbm [thread:$0]  (%p1377_p4), %s1533_s14, 256, %s1531_s20, %s855_s19  }
 0x60a PF: > { %s881_s5 = sand.u32 1, %s1214_s15   ;;  %p1602_p8 = scmp.ne.s32.totalorder %s1584_s22, 0 }
 0x60b   : > { %p1603_p12 = scmp.ge.s32.totalorder %s1226_s18, 2  ;;  %s882_s10 = scalar_lea.sflag [#allocation4], %s881_s5 }
 0x60d   : > { %p1014_p3 = pnand %p1603_p12, %p1602_p8 }
 0x60f   : > { %1209 = dma.done.wait (!%p1014_p3), %s882_s10, 256  }
 0x610   : > { %1211 = vsyncadd (!%p1014_p3), %s882_s10, 4294967040  ;;  %p18_p7 = scmp.ge.s32.totalorder %s1367_s9, 4   ;;  %s1604_s15 = smov %s1218_s16 }
 0x611   : > { %s1605_s16 = smov %s1222_s17  ;;  %s1606_s17 = smov %s1383_s13 }
 0x612   : > { %s1607_s18 = smov %s1367_s9  ;;  %20 = sbr.rel (!%p18_p7) target bundleno = 6 (0x6), region = 92 }
 0x619   :  { %887 = vsyncpa [#allocation3], 1 }
 0x61a   :  { %889 = vsyncpa [#allocation3 + $0x1], 1 }
 0x61b   :  { %890 = vsyncpa [#allocation6], 1 }
 0x61c   :  { %891 = vsyncpa [#allocation4], 1 }
 0x61d   :  { %893 = vsyncpa [#allocation4 + $0x1], 1 }

</bundles_post_ra>
